<compile_context>
chip_gen: v7x
topology: tpu7x:2x2x1
jax: 0.10.0
libtpu: 0.0.40
codegen_flags: <defaults>
</compile_context>

<pallas_src>
import functools
import math

import jax
import jax.numpy as jnp
from jax.experimental import pallas as pl
from jax.experimental.pallas import tpu as pltpu


def _round_up(x, m):
    return ((x + m - 1) // m) * m


def _vmem_limit_bytes():
    """Generation-aware VMEM budget: ~3/4 of capacity, capped at 112 MiB."""
    cap = 64 * 1024 * 1024                              # conservative default (v7x-sized)
    try:
        cap = int(getattr(pltpu.get_tpu_info(), "vmem_capacity_bytes", cap))
    except Exception:
        pass
    return int(min(max(cap * 3 // 4, 32 * 1024 * 1024), 112 * 1024 * 1024))


def _pick_cout_block(c_out):
    """C_out block: full extent when small; 256 only on 256-wide-MXU chips (v6e/v7x)."""
    if c_out <= 128:
        return c_out
    wide_mxu = False
    try:
        kind = jax.devices()[0].device_kind.lower()
        wide_mxu = ("v6" in kind) or ("v7" in kind)
    except Exception:
        pass
    if wide_mxu and c_out % 256 == 0:
        return 256
    return 128


def _pick_lane_tile(l_conv, kc, c_blk, in_bytes, budget):
    """Largest lane (conv-position) tile whose per-step working set fits `budget`."""
    def step_bytes(t):
        return (2 * kc * t * in_bytes        # x_col block, double-buffered
                + 2 * c_blk * t * in_bytes   # output block, double-buffered
                + 3 * c_blk * t * 4)         # f32 matmul tile + temps
    if l_conv <= 512 and step_bytes(l_conv) <= budget:
        return l_conv                        # single full-width tile
    tl = 128
    for cand in (256, 512, 1024, 2048, 4096):
        if cand >= l_conv + 128:             # never grow far past the data
            break
        if step_bytes(cand) <= budget:
            tl = cand
    return tl


def _conv_stats_kernel(xcol_ref, w_ref, sum_ref, css_ref, shift_ref,
                       *, c_blk, w_resident, l_conv):
    """One MXU matmul per tile + per-channel BN partials (tile-centered)."""
    # grid = (pos_tile, batch, cout_block); all axes "parallel".
    x = xcol_ref[0]                                            # (K*C_in, tl), native dtype
    if w_resident:
        c0 = pl.multiple_of(pl.program_id(2) * c_blk, c_blk)
        w = w_ref[pl.ds(c0, c_blk), :]                         # (c_blk, K*C_in)
    else:
        w = w_ref[...]
    y = jnp.dot(w, x, preferred_element_type=jnp.float32)      # (c_blk, tl), f32 acc

    tl = x.shape[-1]
    t = pl.program_id(0)
    n_valid = jnp.minimum(l_conv - t * tl, tl)                 # scalar, >= 1
    lane = jax.lax.broadcasted_iota(jnp.int32, (1, tl), 1)
    valid = (lane < n_valid).astype(jnp.float32)               # (1, tl)

    s = jnp.sum(y, axis=1, keepdims=True)                      # (c_blk, 1); padded cols are 0
    shift = s * (1.0 / n_valid.astype(jnp.float32))            # per-tile per-channel mean
    d = (y - shift) * valid                                    # mask padded positions
    css = jnp.sum(d * d, axis=1, keepdims=True)                # centered sum of squares

    sum_ref[0, 0] = s
    css_ref[0, 0] = css
    shift_ref[0, 0] = shift


def _conv_bn_relu_kernel(xcol_ref, w_ref, scale_ref, shift_ref, o_ref,
                         *, c_blk, w_resident):
    """Recompute the conv tile, fused scale/shift + ReLU, exact-shape store."""
    x = xcol_ref[0]                                            # (K*C_in, tl)
    if w_resident:
        c0 = pl.multiple_of(pl.program_id(2) * c_blk, c_blk)
        w = w_ref[pl.ds(c0, c_blk), :]
    else:
        w = w_ref[...]
    y = jnp.dot(w, x, preferred_element_type=jnp.float32)      # (c_blk, tl)
    ow = o_ref.shape[-1]                                       # output lane width (static)
    out = jnp.maximum(y[:, :ow] * scale_ref[...] + shift_ref[...], 0.0)
    o_ref[0] = out.astype(o_ref.dtype)


def conbr_block_forward(x_ncl, weight, bias, gamma, beta, *, stride, dilation, eps=1e-5):
    """Forward of conbr_block.  x_ncl: (N, C_in, L) -> (N, C_out, ceil(L/stride)).

    `bias` is accepted for API parity but unused: train-mode BatchNorm's mean
    subtraction (taken over the full conv output, count = N*L_conv) cancels it exactly.
    """
    del bias
    n, c_in, length = x_ncl.shape
    c_out, _, ksize = weight.shape
    pad = int(math.ceil(dilation * (ksize - 1) / 2))
    l_conv = (length + 2 * pad - dilation * (ksize - 1) - 1) // stride + 1
    l_keep = -(-length // stride)                 # ceil(L/stride) == PyTorch slice length
    kc = ksize * c_in
    in_dtype = x_ncl.dtype
    in_bytes = jnp.dtype(in_dtype).itemsize

    # ---- blocking / tiling decisions (generation-aware) ----
    c_blk = _pick_cout_block(c_out)
    c_out_pad = _round_up(c_out, c_blk)
    n_cb = c_out_pad // c_blk

    vmem_limit = _vmem_limit_bytes()
    budget = vmem_limit // 2                      # per-step working-set budget (pipeline headroom)
    w_res_bytes = 2 * c_out_pad * kc * in_bytes   # resident weight (worst-case double-buffered)
    w_resident = w_res_bytes <= budget // 3
    w_in_step = w_res_bytes if w_resident else 2 * c_blk * kc * in_bytes
    tl = _pick_lane_tile(l_conv, kc, c_blk, in_bytes, budget - w_in_step)
    # TODO(synk): for very large K*C_in add an "arbitrary" KC grid axis with an f32
    #             accumulator scratch instead of shrinking the lane tile.
    n_conv_t = pl.cdiv(l_conv, tl)
    m_pad = n_conv_t * tl
    out_tl = min(tl, l_keep)                      # == l_keep (full dim) or a multiple of 128
    n_keep_t = pl.cdiv(l_keep, out_tl)

    # ---- wrapper-side im2col: (N, K*C_in, m_pad), conv positions on the lane axis ----
    # TODO(synk): for input-heavy layers gather the K taps in-kernel (halo BlockSpec or
    #             manual DMA) to avoid the K-fold duplication of the input in HBM.
    l_need = (l_conv - 1) * stride + (ksize - 1) * dilation + 1
    x_pad = jnp.pad(x_ncl, ((0, 0), (0, 0), (pad, max(0, l_need - length - pad))))
    taps = [
        jax.lax.slice(x_pad, (0, 0, k * dilation),
                      (n, c_in, k * dilation + (l_conv - 1) * stride + 1),
                      (1, 1, stride))
        for k in range(ksize)
    ]
    x_col = jnp.concatenate(taps, axis=1)                              # (N, K*C_in, l_conv)
    if m_pad > l_conv:
        x_col = jnp.pad(x_col, ((0, 0), (0, 0), (0, m_pad - l_conv)))  # zero cols -> zero conv

    # Flattened weights (C_out_pad, K*C_in) matching x_col's k-major channel order.
    w_flat = jnp.transpose(weight, (0, 2, 1)).reshape(c_out, kc)
    w_flat = jnp.pad(w_flat, ((0, c_out_pad - c_out), (0, 0))).astype(in_dtype)

    if w_resident:
        w_spec = pl.BlockSpec((c_out_pad, kc), lambda t, b, c: (0, 0))   # constant -> fetched once
    else:
        w_spec = pl.BlockSpec((c_blk, kc), lambda t, b, c: (c, 0))

    cparams = pltpu.CompilerParams(
        dimension_semantics=("parallel", "parallel", "parallel"),
        vmem_limit_bytes=vmem_limit)

    # ---- pass 1: per-tile per-channel BN partials (no conv intermediate in HBM) ----
    stats_shape = jax.ShapeDtypeStruct((n, n_conv_t, c_out_pad, 1), jnp.float32)
    stat_spec = pl.BlockSpec((1, 1, c_blk, 1), lambda t, b, c: (b, t, c, 0))
    sums, css, shifts = pl.pallas_call(
        functools.partial(_conv_stats_kernel, c_blk=c_blk, w_resident=w_resident,
                          l_conv=l_conv),
        out_shape=(stats_shape, stats_shape, stats_shape),
        grid_spec=pltpu.PrefetchScalarGridSpec(
            num_scalar_prefetch=0,
            grid=(n_conv_t, n, n_cb),
            in_specs=[
                pl.BlockSpec((1, kc, tl), lambda t, b, c: (b, 0, t)),
                w_spec,
            ],
            out_specs=[stat_spec, stat_spec, stat_spec],
        ),
        compiler_params=cparams,
    )(x_col, w_flat)

    # ---- tiny (C_out,)-sized Chan-style merge + BN folding (plain JAX) ----
    sums, css, shifts = sums[..., 0], css[..., 0], shifts[..., 0]            # (N, T, C_pad)
    nv = jnp.minimum(l_conv - jnp.arange(n_conv_t) * tl, tl).astype(jnp.float32)  # (T,)
    count = jnp.float32(n * l_conv)
    mean = jnp.sum(sums, axis=(0, 1)) / count                                # (C_pad,)
    d = shifts - mean[None, None, :]
    m2 = css + 2.0 * d * (sums - nv[None, :, None] * shifts) + nv[None, :, None] * jnp.square(d)
    var = jnp.maximum(jnp.sum(m2, axis=(0, 1)) / count, 0.0)                 # biased (train-mode BN)
    g = jnp.pad(gamma.astype(jnp.float32), (0, c_out_pad - c_out), constant_values=1.0)
    bt = jnp.pad(beta.astype(jnp.float32), (0, c_out_pad - c_out))
    scale_v = g * jax.lax.rsqrt(var + eps)
    shift_v = bt - mean * scale_v
    scale = scale_v.reshape(c_out_pad, 1)
    shift = shift_v.reshape(c_out_pad, 1)

    # ---- pass 2: recompute conv tile, fused BN affine + ReLU, exact-shape output ----
    out = pl.pallas_call(
        functools.partial(_conv_bn_relu_kernel, c_blk=c_blk, w_resident=w_resident),
        out_shape=jax.ShapeDtypeStruct((n, c_out, l_keep), in_dtype),
        grid_spec=pltpu.PrefetchScalarGridSpec(
            num_scalar_prefetch=0,
            grid=(n_keep_t, n, n_cb),
            in_specs=[
                pl.BlockSpec((1, kc, tl), lambda t, b, c: (b, 0, t)),
                w_spec,
                pl.BlockSpec((c_blk, 1), lambda t, b, c: (c, 0)),
                pl.BlockSpec((c_blk, 1), lambda t, b, c: (c, 0)),
            ],
            out_specs=pl.BlockSpec((1, c_blk, out_tl), lambda t, b, c: (b, c, t)),
        ),
        compiler_params=cparams,
    )(x_col, w_flat, scale, shift)
    return out                                                # already exact NCL shape


def _reference(x_ncl, weight, bias, gamma, beta, stride, dilation, eps=1e-5):
    """Pure-JAX reference of the PyTorch forward (train-mode BatchNorm)."""
    ksize = weight.shape[2]
    pad = int(math.ceil(dilation * (ksize - 1) / 2))
    y = jax.lax.conv_general_dilated(
        x_ncl, weight, window_strides=(stride,), padding=[(pad, pad)],
        rhs_dilation=(dilation,), dimension_numbers=("NCH", "OIH", "NCH"))
    y = y + bias[None, :, None]
    mean = jnp.mean(y, axis=(0, 2), keepdims=True)
    var = jnp.mean(jnp.square(y - mean), axis=(0, 2), keepdims=True)
    y = (y - mean) / jnp.sqrt(var + eps) * gamma[None, :, None] + beta[None, :, None]
    y = jnp.maximum(y, 0.0)
    return y[:, :, : -(-x_ncl.shape[2] // stride)]


if __name__ == "__main__":
    key = jax.random.PRNGKey(0)
    k_x, k_w, k_b = jax.random.split(key, 3)

    # conbr_block(in_layer=4, out_layer=8, kernel_size=3, stride=2, dilation=2)
    N, C_IN, C_OUT, L = 2, 4, 8, 16
    KSIZE, STRIDE, DILATION = 3, 2, 2

    x = jax.random.normal(k_x, (N, C_IN, L), dtype=jnp.float32)   # NCL input, like PyTorch

    bound = 1.0 / math.sqrt(C_IN * KSIZE)
    weight = jax.random.uniform(k_w, (C_OUT, C_IN, KSIZE), jnp.float32, -bound, bound)
    bias = jax.random.uniform(k_b, (C_OUT,), jnp.float32, -bound, bound)
    gamma = jnp.ones((C_OUT,), jnp.float32)
    beta = jnp.zeros((C_OUT,), jnp.float32)

    fwd = jax.jit(functools.partial(conbr_block_forward, stride=STRIDE, dilation=DILATION))
    out = jax.block_until_ready(fwd(x, weight, bias, gamma, beta))

    ref = _reference(x, weight, bias, gamma, beta, STRIDE, DILATION)
    assert out.shape == ref.shape, (out.shape, ref.shape)
    err = float(jnp.max(jnp.abs(out - ref)))
    assert err < 1e-4, err
    print("KERNEL_OK")
</pallas_src>

<mosaic_0001>
module attributes {stable_mosaic.version = 11 : i64} {
  func.func @_conv_stats_kernel(%arg0: i32, %arg1: i32, %arg2: i32, %arg3: memref<1x12x8xf32, #tpu.memory_space<vmem>>, %arg4: memref<8x12xf32, #tpu.memory_space<vmem>>, %arg5: memref<1x1x8x1xf32, #tpu.memory_space<vmem>>, %arg6: memref<1x1x8x1xf32, #tpu.memory_space<vmem>>, %arg7: memref<1x1x8x1xf32, #tpu.memory_space<vmem>>) attributes {dimension_semantics = [#tpu.dimension_semantics<parallel>, #tpu.dimension_semantics<parallel>, #tpu.dimension_semantics<parallel>], iteration_bounds = array<i64: 1, 2, 1>, scalar_prefetch = 0 : i64, scratch_operands = 0 : i64, tpu.core_type = #tpu.core_type<tc>, window_params = [{transform_indices = @transform_0, window_bounds = array<i64: 1, 12, 8>}, {pipeline_mode = #tpu.pipeline_mode<synchronous>, transform_indices = @transform_1, window_bounds = array<i64: 8, 12>}, {transform_indices = @transform_2, window_bounds = array<i64: 1, 1, 8, 1>}, {transform_indices = @transform_3, window_bounds = array<i64: 1, 1, 8, 1>}, {transform_indices = @transform_4, window_bounds = array<i64: 1, 1, 8, 1>}]} {
    %c0 = arith.constant 0 : index
    %c0_0 = arith.constant 0 : index
    %c0_1 = arith.constant 0 : index
    %0 = vector.load %arg3[%c0, %c0_0, %c0_1] : memref<1x12x8xf32, #tpu.memory_space<vmem>>, vector<1x12x8xf32>
    %1 = vector.shape_cast %0 : vector<1x12x8xf32> to vector<12x8xf32>
    %c8_i32 = arith.constant 8 : i32
    %2 = arith.muli %arg2, %c8_i32 : i32
    %3 = tpu.assume_multiple %2, 8 : i32
    %4 = arith.index_cast %3 : i32 to index
    %c0_2 = arith.constant 0 : index
    %5 = vector.load %arg4[%4, %c0_2] : memref<8x12xf32, #tpu.memory_space<vmem>>, vector<8x12xf32>
    %cst = arith.constant dense<0.000000e+00> : vector<8x8xf32>
    %6 = tpu.matmul %5, %1, %cst {dimension_numbers = #tpu.dot_dimension_numbers<[1], [0], [0], [1], [0, 0, 1, 1], [], []>} : vector<8x12xf32>, vector<12x8xf32>, vector<8x8xf32> -> vector<8x8xf32>
    %c8_i32_3 = arith.constant 8 : i32
    %7 = arith.muli %arg0, %c8_i32_3 : i32
    %c8_i32_4 = arith.constant 8 : i32
    %8 = arith.subi %c8_i32_4, %7 : i32
    %c8_i32_5 = arith.constant 8 : i32
    %9 = arith.minsi %8, %c8_i32_5 : i32
    %10 = tpu.iota {dimensions = array<i32: 1>} : vector<1x8xi32>
    %11 = vector.broadcast %9 : i32 to vector<1x8xi32>
    %12 = arith.cmpi slt, %10, %11 : vector<1x8xi32>
    %13 = arith.extui %12 : vector<1x8xi1> to vector<1x8xi32>
    %14 = arith.sitofp %13 : vector<1x8xi32> to vector<1x8xf32>
    %cst_6 = arith.constant dense<0.000000e+00> : vector<8xf32>
    %15 = vector.multi_reduction <add>, %6, %cst_6 [1] : vector<8x8xf32> to vector<8xf32>
    %16 = vector.shape_cast %15 : vector<8xf32> to vector<8x1xf32>
    %17 = arith.sitofp %9 : i32 to f32
    %cst_7 = arith.constant 1.000000e+00 : f32
    %18 = arith.divf %cst_7, %17 : f32
    %19 = vector.broadcast %18 : f32 to vector<8x1xf32>
    %20 = arith.mulf %16, %19 : vector<8x1xf32>
    %21 = vector.broadcast %20 : vector<8x1xf32> to vector<8x8xf32>
    %22 = arith.subf %6, %21 : vector<8x8xf32>
    %23 = vector.broadcast %14 : vector<1x8xf32> to vector<8x8xf32>
    %24 = arith.mulf %22, %23 : vector<8x8xf32>
    %25 = arith.mulf %24, %24 : vector<8x8xf32>
    %cst_8 = arith.constant dense<0.000000e+00> : vector<8xf32>
    %26 = vector.multi_reduction <add>, %25, %cst_8 [1] : vector<8x8xf32> to vector<8xf32>
    %27 = vector.shape_cast %26 : vector<8xf32> to vector<8x1xf32>
    %c0_9 = arith.constant 0 : index
    %c0_10 = arith.constant 0 : index
    %c0_11 = arith.constant 0 : index
    %c0_12 = arith.constant 0 : index
    %28 = vector.load %arg5[%c0_9, %c0_10, %c0_11, %c0_12] : memref<1x1x8x1xf32, #tpu.memory_space<vmem>>, vector<1x1x8x1xf32>
    %29 = vector.shape_cast %28 : vector<1x1x8x1xf32> to vector<8x1xf32>
    %30 = vector.shape_cast %16 : vector<8x1xf32> to vector<1x1x8x1xf32>
    tpu.vector_store %arg5[%c0_9, %c0_10, %c0_11, %c0_12], %30 {strides = array<i32>} : memref<1x1x8x1xf32, #tpu.memory_space<vmem>>, vector<1x1x8x1xf32>,
    %c0_13 = arith.constant 0 : index
    %c0_14 = arith.constant 0 : index
    %c0_15 = arith.constant 0 : index
    %c0_16 = arith.constant 0 : index
    %31 = vector.load %arg6[%c0_13, %c0_14, %c0_15, %c0_16] : memref<1x1x8x1xf32, #tpu.memory_space<vmem>>, vector<1x1x8x1xf32>
    %32 = vector.shape_cast %31 : vector<1x1x8x1xf32> to vector<8x1xf32>
    %33 = vector.shape_cast %27 : vector<8x1xf32> to vector<1x1x8x1xf32>
    tpu.vector_store %arg6[%c0_13, %c0_14, %c0_15, %c0_16], %33 {strides = array<i32>} : memref<1x1x8x1xf32, #tpu.memory_space<vmem>>, vector<1x1x8x1xf32>,
    %c0_17 = arith.constant 0 : index
    %c0_18 = arith.constant 0 : index
    %c0_19 = arith.constant 0 : index
    %c0_20 = arith.constant 0 : index
    %34 = vector.load %arg7[%c0_17, %c0_18, %c0_19, %c0_20] : memref<1x1x8x1xf32, #tpu.memory_space<vmem>>, vector<1x1x8x1xf32>
    %35 = vector.shape_cast %34 : vector<1x1x8x1xf32> to vector<8x1xf32>
    %36 = vector.shape_cast %20 : vector<8x1xf32> to vector<1x1x8x1xf32>
    tpu.vector_store %arg7[%c0_17, %c0_18, %c0_19, %c0_20], %36 {strides = array<i32>} : memref<1x1x8x1xf32, #tpu.memory_space<vmem>>, vector<1x1x8x1xf32>,
    return
  }
  func.func @transform_0(%arg0: i32, %arg1: i32, %arg2: i32) -> (i32, i32, i32) {
    %c0_i32 = arith.constant 0 : i32
    %c0_i32_0 = arith.constant 0 : i32
    return %arg1, %c0_i32, %arg0 : i32, i32, i32
  }
  func.func @transform_1(%arg0: i32, %arg1: i32, %arg2: i32) -> (i32, i32) {
    %c0_i32 = arith.constant 0 : i32
    %c0_i32_0 = arith.constant 0 : i32
    %c0_i32_1 = arith.constant 0 : i32
    return %c0_i32, %c0_i32_0 : i32, i32
  }
  func.func @transform_2(%arg0: i32, %arg1: i32, %arg2: i32) -> (i32, i32, i32, i32) {
    %c0_i32 = arith.constant 0 : i32
    %c0_i32_0 = arith.constant 0 : i32
    return %arg1, %arg0, %arg2, %c0_i32 : i32, i32, i32, i32
  }
  func.func @transform_3(%arg0: i32, %arg1: i32, %arg2: i32) -> (i32, i32, i32, i32) {
    %c0_i32 = arith.constant 0 : i32
    %c0_i32_0 = arith.constant 0 : i32
    return %arg1, %arg0, %arg2, %c0_i32 : i32, i32, i32, i32
  }
  func.func @transform_4(%arg0: i32, %arg1: i32, %arg2: i32) -> (i32, i32, i32, i32) {
    %c0_i32 = arith.constant 0 : i32
    %c0_i32_0 = arith.constant 0 : i32
    return %arg1, %arg0, %arg2, %c0_i32 : i32, i32, i32, i32
  }
}

module attributes {stable_mosaic.version = 11 : i64} {
  func.func @_conv_bn_relu_kernel(%arg0: i32, %arg1: i32, %arg2: i32, %arg3: memref<1x12x8xf32, #tpu.memory_space<vmem>>, %arg4: memref<8x12xf32, #tpu.memory_space<vmem>>, %arg5: memref<8x1xf32, #tpu.memory_space<vmem>>, %arg6: memref<8x1xf32, #tpu.memory_space<vmem>>, %arg7: memref<1x8x8xf32, #tpu.memory_space<vmem>>) attributes {dimension_semantics = [#tpu.dimension_semantics<parallel>, #tpu.dimension_semantics<parallel>, #tpu.dimension_semantics<parallel>], iteration_bounds = array<i64: 1, 2, 1>, scalar_prefetch = 0 : i64, scratch_operands = 0 : i64, tpu.core_type = #tpu.core_type<tc>, window_params = [{transform_indices = @transform_0, window_bounds = array<i64: 1, 12, 8>}, {pipeline_mode = #tpu.pipeline_mode<synchronous>, transform_indices = @transform_1, window_bounds = array<i64: 8, 12>}, {transform_indices = @transform_2, window_bounds = array<i64: 8, 1>}, {transform_indices = @transform_3, window_bounds = array<i64: 8, 1>}, {transform_indices = @transform_4, window_bounds = array<i64: 1, 8, 8>}]} {
    %c0 = arith.constant 0 : index
    %c0_0 = arith.constant 0 : index
    %c0_1 = arith.constant 0 : index
    %0 = vector.load %arg3[%c0, %c0_0, %c0_1] : memref<1x12x8xf32, #tpu.memory_space<vmem>>, vector<1x12x8xf32>
    %1 = vector.shape_cast %0 : vector<1x12x8xf32> to vector<12x8xf32>
    %c8_i32 = arith.constant 8 : i32
    %2 = arith.muli %arg2, %c8_i32 : i32
    %3 = tpu.assume_multiple %2, 8 : i32
    %4 = arith.index_cast %3 : i32 to index
    %c0_2 = arith.constant 0 : index
    %5 = vector.load %arg4[%4, %c0_2] : memref<8x12xf32, #tpu.memory_space<vmem>>, vector<8x12xf32>
    %cst = arith.constant dense<0.000000e+00> : vector<8x8xf32>
    %6 = tpu.matmul %5, %1, %cst {dimension_numbers = #tpu.dot_dimension_numbers<[1], [0], [0], [1], [0, 0, 1, 1], [], []>} : vector<8x12xf32>, vector<12x8xf32>, vector<8x8xf32> -> vector<8x8xf32>
    %c0_3 = arith.constant 0 : index
    %c0_4 = arith.constant 0 : index
    %7 = vector.load %arg5[%c0_3, %c0_4] : memref<8x1xf32, #tpu.memory_space<vmem>>, vector<8x1xf32>
    %8 = vector.broadcast %7 : vector<8x1xf32> to vector<8x8xf32>
    %9 = arith.mulf %6, %8 : vector<8x8xf32>
    %c0_5 = arith.constant 0 : index
    %c0_6 = arith.constant 0 : index
    %10 = vector.load %arg6[%c0_5, %c0_6] : memref<8x1xf32, #tpu.memory_space<vmem>>, vector<8x1xf32>
    %11 = vector.broadcast %10 : vector<8x1xf32> to vector<8x8xf32>
    %12 = arith.addf %9, %11 : vector<8x8xf32>
    %cst_7 = arith.constant 0.000000e+00 : f32
    %13 = vector.broadcast %cst_7 : f32 to vector<8x8xf32>
    %14 = arith.maximumf %12, %13 : vector<8x8xf32>
    %c0_8 = arith.constant 0 : index
    %c0_9 = arith.constant 0 : index
    %c0_10 = arith.constant 0 : index
    %15 = vector.load %arg7[%c0_8, %c0_9, %c0_10] : memref<1x8x8xf32, #tpu.memory_space<vmem>>, vector<1x8x8xf32>
    %16 = vector.shape_cast %15 : vector<1x8x8xf32> to vector<8x8xf32>
    %17 = vector.shape_cast %14 : vector<8x8xf32> to vector<1x8x8xf32>
    tpu.vector_store %arg7[%c0_8, %c0_9, %c0_10], %17 {strides = array<i32>} : memref<1x8x8xf32, #tpu.memory_space<vmem>>, vector<1x8x8xf32>,
    return
  }
  func.func @transform_0(%arg0: i32, %arg1: i32, %arg2: i32) -> (i32, i32, i32) {
    %c0_i32 = arith.constant 0 : i32
    %c0_i32_0 = arith.constant 0 : i32
    return %arg1, %c0_i32, %arg0 : i32, i32, i32
  }
  func.func @transform_1(%arg0: i32, %arg1: i32, %arg2: i32) -> (i32, i32) {
    %c0_i32 = arith.constant 0 : i32
    %c0_i32_0 = arith.constant 0 : i32
    %c0_i32_1 = arith.constant 0 : i32
    return %c0_i32, %c0_i32_0 : i32, i32
  }
  func.func @transform_2(%arg0: i32, %arg1: i32, %arg2: i32) -> (i32, i32) {
    %c0_i32 = arith.constant 0 : i32
    %c0_i32_0 = arith.constant 0 : i32
    return %arg2, %c0_i32 : i32, i32
  }
  func.func @transform_3(%arg0: i32, %arg1: i32, %arg2: i32) -> (i32, i32) {
    %c0_i32 = arith.constant 0 : i32
    %c0_i32_0 = arith.constant 0 : i32
    return %arg2, %c0_i32 : i32, i32
  }
  func.func @transform_4(%arg0: i32, %arg1: i32, %arg2: i32) -> (i32, i32, i32) {
    %c0_i32 = arith.constant 0 : i32
    return %arg1, %arg2, %arg0 : i32, i32, i32
  }
}

</mosaic_0001>

<bundles_post_ra>
// kernel: conbr_block_forward.3
= control target key start
LH: loop header
LB: loop body
LE: loop exit
PB: predicated region body
PF: predicated region fallthrough
CT: control target
= control target key end

     0   :  { %9 = vsyncpa [#allocation3], 0  ;;  %s814_s0 = inlined_call_operand.vmem [shape: f32[2,12,8], index: 0, kind: input, shape index: {}]   ;;  %s815_s1 = inlined_call_operand.vmem [shape: f32[8,12], index: 1, kind: input, shape index: {}]   ;;  %s816_s2 = inlined_call_operand.vmem [shape: f32[8,1], index: 2, kind: input, shape index: {}]   ;;  %s817_s3 = inlined_call_operand.vmem [shape: f32[8,1], index: 3, kind: input, shape index: {}]   ;;  %s818_s4 = inlined_call_operand.hbm [shape: f32[2,8,8], index: 4, kind: output, shape index: {}]  }
   0x1   :  { %11 = vsyncpa [#allocation3 + $0x1], 0  ;;  %s693_s15 = smov 0   ;;  %s695_s16 = smov 0  }
   0x2   :  { %s697_s17 = smov 0   ;;  %s699_s18 = smov 0  }
   0x3   :  { %s701_s19 = smov 0   ;;  %s703_s20 = smov 0  }
   0x4 LB: > { %s490_s21 = sadd.s32 4294967295, %s660_s20   ;;  %s491_s22 = sadd.s32 4294967294, %s660_s20   ;;  %s660_s20 = sphi %s703_s20, %s17_s20   ;;  %s656_s19 = sphi %s701_s19, %s825_s19   ;;  %s652_s18 = sphi %s699_s18, %s824_s18   ;;  %s648_s17 = sphi %s697_s17, %s823_s17   ;;  %s644_s16 = sphi %s695_s16, %s822_s16   ;;  %s640_s15 = sphi %s693_s15, %s821_s15  }
   0x5   : > { %s32_s23 = sadd.s32 1, %s656_s19  ;;  %s148_s24 = sadd.s32 1, %s648_s17 }
   0x6   : > { %p34_p0 = scmp.ge.s32.totalorder %s32_s23, 2  ;;  %p158_p1 = scmp.ne.s32.totalorder %s648_s17, %s644_s16 }
   0x7   : > { %p159_p2 = scmp.eq.s32.totalorder %s490_s21, 1  ;;  %p164_p3 = scmp.ne.s32.totalorder %s644_s16, %s640_s15 }
   0x8   : > { %s827_s23 = smov (%p34_p0, %s32_s23), 0  ;;  %p165_p5 = scmp.eq.s32.totalorder %s491_s22, 1 }
   0x9   : > { %p733_p4 = por %p159_p2, %p158_p1  ;;  %s141_s26 = ssub.s32 %s656_s19, %s827_s23 }
   0xa   : > { %p496_p6 = scmp.ge.s32.totalorder %s660_s20, 1  ;;  %p146_p7 = scmp.eq.s32.totalorder %s141_s26, 0 }
   0xb   : > { %p740_p8 = por %p165_p5, %p164_p3  ;;  %p211_p9 = scmp.lt.s32.totalorder %s660_s20, 3 }
   0xc   : > { %s746_s28 = scalar_select %p146_p7, %s648_s17, %s148_s24  }
   0xd   : > { %p212_p10 = pnand %p496_p6, %p211_p9 }
   0xe   : > { %p248_p11 = scmp.lt.s32.totalorder (!%p212_p10), %s652_s18, 1  ;;  %v662_v0 = vmov (!%p212_p10), 0.0|0.0   ;;  %v347_v1 = vld [vmem:[%s816_s2] sm:$0xff] (!%p212_p10)  ;;  %vm663_vm0 = vmmov (!%p212_p10), 0   ;;  %v664_v2 = vmov (!%p212_p10), 0.0   ;;  %v665_v3 = vmov (!%p212_p10), 0  }
   0xf   : > { %215 = sbr.rel (%p212_p10) target bundleno = 264 (0x108), region = 36  ;;  %517 = vmatprep.subr.bf16.mxu0 (!%p212_p10), %v662_v0  ;;  %514 = vmatprep.mubr.msk.f32.mxu0 (!%p212_p10), %vm663_vm0, %v664_v2  ;;  %vm273_vm1 = vcmask (!%p212_p10), 1043456   ;;  %v354_v4 = vld [vmem:[%s817_s3] sm:$0xff] (!%p212_p10)  ;;  %vm666_vm2 = vmmov (!%p212_p10), 1   ;;  %vm269_vm4 = vcmask (!%p212_p10), 97280   ;;  %s245_s14 = sand.u32 (!%p212_p10), 1, %s644_s16  }
  0x10   : > { %581 = vset.pattern.permute.xlu0 (!%p212_p10), %v665_v3  ;;  %vm519_vm3 = vmpackc.low (!%p212_p10), %vm273_vm1, %vm666_vm2  ;;  %v268_v8 = vld [vmem:[%s815_s1] sm:$0xff] (!%p212_p10)  ;;  %s497_s21 = sshll.u32 (!%p212_p10), %s245_s14, 3  ;;  %s503_s22 = sshll.u32 (!%p212_p10), %s652_s18, 7  ;;  %vm362_vm5 = vcmask (!%p212_p10), 64512  }
  0x11   : > { %350 = vperm.xlu0 (!%p212_p10), %581, %v347_v1   ;;  %s247_s24 = scalar_lea.vmem (!%p212_p10), [#allocation2], %s497_s21 }
  0x12   : > { %s380_s26 = sshll.u32 (!%p212_p10), %s247_s24, 4  ;;  %s769_s26 = int_to_ptr.vmem [resolvable:$true] %s380_s26 }
  0x13   : > { %s582_s7 = scalar_lea.vmem (!%p212_p10), %s769_s26, 128 }
  0x14   : > { %p583_p12 = scmp.ne.s32.totalorder (!%p212_p10), %s769_s26, %s582_s7 }
  0x15   : > { %357 = vperm.xlu0 (!%p212_p10), %581, %v354_v4  }
  0x16   : > { %s249_s5 = scalar_select %p248_p11, %s652_s18, 1 }
  0x17   : > { %p584_p13 = pnand %p583_p12, %p733_p4  ;;  %s667_s18 = smov [#allocation2]  }
  0x18   : > { %s506_s6 = sshll.u32 %s249_s5, 4  ;;  %s767_s5 = scalar_lea.hbm %s818_s4, %s503_s22 }
  0x19   : > { %s255_s11 = scalar_lea.vmem %s814_s0, %s506_s6  ;;  %s365_s6 = scalar_lea.sflag [#allocation3], %s245_s14 }
  0x1a   : > { %v264_v5 = vld [vmem:[%s255_s11] sm:$0xff]  ;;  %v265_v6 = vld [vmem:[%s255_s11 + $0x8] sm:$0xf]  ;;  %p585_p0 = pneg %p584_p13  ;;  %s586_s8 = sshll.u32 %s667_s18, 4  ;;  %s587_s8 = int_to_ptr.vmem [resolvable:$false] %s586_s8 }
  0x1b   : > { %v518_v7 = vpack.c.bf16 %v265_v6, %v264_v5  ;;  %s588_s9 = scalar_lea.vmem %s587_s8, 256  ;;  %p589_p1 = scmp.lt.s32.totalorder %s769_s26, %s587_s8 }
  0x1c   : > { %p590_p2 = scmp.lt.s32.totalorder %s588_s9, %s582_s7 }
  0x1d   : > { %520 = vmatpush3.bf16.msk.msra.mxu0 %vm519_vm3, %v518_v7 }
  0x1e   : > { %p591_p3 = por %p590_p2, %p589_p1 }
  0x20   : > { %515 = vmatmul.mubr.msk.f32.vlgmr.msra.gmra.mrb[0].mxu0 %vm269_vm4, %v268_v8  ;;  %p592_p5 = pnand %p591_p3, %p585_p0 }
  0x90   : > { %v351_v9 = vpop.permute.xlu0 %350 }
  0x94   : > { %v358_v13 = vpop.permute.xlu0 %357 }
  0xf3   : > { %v343_v10 = vpop.f32.mrb[0].mxu0 }
  0xf4   : > { %v353_v11 = vmul.f32 %v351_v9, %v343_v10  ;;  %v516_v12 = vpop.f32.mrb[1].mxu0 }
  0xf6   : > { %v360_v14 = vadd.f32 %v358_v13, %v353_v11 }
  0xf8   : > { %v361_v15 = vmax.f32 %v360_v14, 0.0 }
  0xfa   : > { %363 = vst.msk [vmem:[%s247_s24] sm:$0xff] %vm362_vm5, %v361_v15 }
  0xfb   : > { %595 = shalt.err (!%p592_p5)
}
  0xfc   : > { %s596_s10 = scalar_lea.hbm %s767_s5, 128  ;;  %s600_s13 = scalar_lea.hbm %s818_s4, 256 }
  0xfd   : > { %p597_p6 = scmp.ne.s32.totalorder %s767_s5, %s596_s10  ;;  %p601_p10 = scmp.lt.u32.totalorder %s767_s5, %s818_s4 }
  0xfe   : > { %p602_p11 = scmp.lt.u32.totalorder %s600_s13, %s596_s10  ;;  %p604_p13 = scmp.lt.u32.totalorder %s596_s10, %s767_s5 }
  0xff   : > { %p598_p7 = pnand %p597_p6, %p733_p4 }
 0x100   : > { %p603_p12 = por %p602_p11, %p601_p10 }
 0x101   : > { %p599_p9 = pneg %p598_p7 }
 0x102   : > { %p605_p0 = por %p604_p13, %p603_p12 }
 0x104   : > { %p606_p1 = pnand %p605_p0, %p599_p9 }
 0x106   : > { %609 = shalt.err (!%p606_p1)
}
 0x107   : > { %521 = dma.vmem_to_hbm [thread:$0]  (%p733_p4), %s769_s26, 128, %s767_s5, %s365_s6  }
 0x108 PF: > { %p527_p2 = scmp.ge.s32.totalorder %s660_s20, 2  ;;  %s392_s22 = sand.u32 1, %s640_s15  }
 0x109   : > { %s393_s24 = scalar_lea.sflag [#allocation3], %s392_s22 }
 0x10a   : > { %p524_p3 = pnand %p527_p2, %p740_p8 }
 0x10c   : > { %635 = dma.done.wait (!%p524_p3), %s393_s24, 128  }
 0x10d   : > { %637 = vsyncadd (!%p524_p3), %s393_s24, 4294967168  ;;  %s17_s20 = sadd.s32 1, %s660_s20   ;;  %s821_s15 = smov %s644_s16 }
 0x10e   : > { %p14_p5 = scmp.ge.s32.totalorder %s17_s20, 4   ;;  %s822_s16 = smov %s648_s17 }
 0x10f   : > { %s823_s17 = smov %s746_s28  ;;  %s824_s18 = smov %s656_s19 }
 0x110   : > { %s825_s19 = smov %s827_s23  ;;  %16 = sbr.rel (!%p14_p5) target bundleno = 4 (0x4), region = 78 }
 0x117   :  { %398 = vsyncpa [#allocation3], 1 }
 0x118   :  { %400 = vsyncpa [#allocation3 + $0x1], 1 }

// kernel: conbr_block_forward.2
= control target key start
LH: loop header
LB: loop body
LE: loop exit
PB: predicated region body
PF: predicated region fallthrough
CT: control target
= control target key end

     0   :  { %s713_s15 = smov 0   ;;  %s715_s16 = smov 0   ;;  %s757_s0 = inlined_call_operand.vmem [shape: f32[2,12,8], index: 0, kind: input, shape index: {}]   ;;  %s758_s1 = inlined_call_operand.vmem [shape: f32[8,12], index: 1, kind: input, shape index: {}]   ;;  %s759_s2 = inlined_call_operand.vmem [shape: f32[2,1,8,1], index: 2, kind: output, shape index: {0}]   ;;  %s760_s3 = inlined_call_operand.vmem [shape: f32[2,1,8,1], index: 3, kind: output, shape index: {1}]   ;;  %s761_s4 = inlined_call_operand.vmem [shape: f32[2,1,8,1], index: 4, kind: output, shape index: {2}]  }
   0x1   :  { %s717_s17 = smov 0  }
   0x2 LB: > { %s30_s18 = sadd.s32 1, %s678_s16  ;;  %p606_p0 = scmp.ge.s32.totalorder %s682_s17, 1  ;;  %s682_s17 = sphi %s717_s17, %s15_s17   ;;  %s678_s16 = sphi %s715_s16, %s763_s16   ;;  %s674_s15 = sphi %s713_s15, %s762_s15  }
   0x3   : > { %p32_p1 = scmp.ge.s32.totalorder %s30_s18, 2  ;;  %p203_p2 = scmp.lt.s32.totalorder %s682_s17, 3 }
   0x5   : > { %s765_s18 = smov (%p32_p1, %s30_s18), 0  ;;  %p204_p3 = pnand %p606_p0, %p203_p2 }
   0x6   : > { %p257_p4 = scmp.lt.s32.totalorder (!%p204_p3), %s674_s15, 1  ;;  %v684_v0 = vmov (!%p204_p3), 0.0|0.0   ;;  %vm685_vm0 = vmmov (!%p204_p3), 0   ;;  %v686_v1 = vmov (!%p204_p3), 0.0   ;;  %vm304_vm1 = vcmask (!%p204_p3), 1043456   ;;  %v299_v5 = vld [vmem:[%s758_s1] sm:$0xff] (!%p204_p3) }
   0x7   : > { %207 = sbr.rel (%p204_p3) target bundleno = 530 (0x212), region = 28  ;;  %628 = vmatprep.subr.bf16.mxu0 (!%p204_p3), %v684_v0  ;;  %625 = vmatprep.mubr.msk.f32.mxu0 (!%p204_p3), %vm685_vm0, %v686_v1  ;;  %vm687_vm2 = vmmov (!%p204_p3), 1   ;;  %vm300_vm4 = vcmask (!%p204_p3), 97280   ;;  %vm388_vm5 = vcmask (!%p204_p3), 64512   ;;  %v382_v9 = vlaneseq (!%p204_p3) }
   0x8   : > { %vm630_vm3 = vmpackc.low (!%p204_p3), %vm304_vm1, %vm687_vm2  ;;  %vm404_vm6 = vcmask (!%p204_p3), 7168  }
   0x9   : > { %v383_v10 = vand.u32 (!%p204_p3), 127, %v382_v9 }
   0xb   : > { %vm385_vm7 = vcmp.lt.s32.totalorder (!%p204_p3), %v383_v10, 8 }
   0xc   : > { %v614_v13 = vsel (!%p204_p3), %vm385_vm7, 1.0, %v686_v1 }
   0xe   : > { %s767_s15 = smov (!%p257_p4, %s674_s15), 1 }
   0xf   : > { %s617_s19 = sshll.u32 %s767_s15, 4  ;;  %s609_s25 = sshll.u32 %s767_s15, 3 }
  0x10   : > { %s264_s22 = scalar_lea.vmem %s757_s0, %s617_s19  ;;  %s274_s28 = scalar_lea.vmem %s759_s2, %s609_s25 }
  0x11   : > { %v295_v2 = vld [vmem:[%s264_s22] sm:$0xff]  ;;  %v296_v3 = vld [vmem:[%s264_s22 + $0x8] sm:$0xf]  ;;  %s294_s5 = scalar_lea.vmem %s761_s4, %s609_s25  ;;  %s284_s8 = scalar_lea.vmem %s760_s3, %s609_s25 }
  0x12   : > { %v629_v4 = vpack.c.bf16 %v296_v3, %v295_v2 }
  0x14   : > { %631 = vmatpush3.bf16.msk.msra.mxu0 %vm630_vm3, %v629_v4 }
  0x17   : > { %626 = vmatmul.mubr.msk.f32.vlgmr.msra.gmra.mrb[0].mxu0 %vm300_vm4, %v299_v5 }
  0xea   : > { %v374_v6 = vpop.f32.mrb[0].mxu0 }
  0xeb   : > { %v627_v7 = vpop.f32.mrb[1].mxu0  ;;  %v389_v8 = vsel %vm388_vm5, %v374_v6, 0.0 }
  0xec   : > { %390 = vadd.xlane.f32.xlu0 %v389_v8 }
 0x179   : > { %v391_v11 = vpop.xlane.xlu0 %390 }
 0x17a   : > { %v397_v12 = vmul.f32 0.125, %v391_v11  ;;  %405 = vst.msk [vmem:[%s274_s28] sm:$0xff] %vm404_vm6, %v391_v11 }
 0x17c   : > { %v398_v14 = vsub.f32 %v374_v6, %v397_v12  ;;  %407 = vst.msk [vmem:[%s294_s5] sm:$0xff] %vm404_vm6, %v397_v12 }
 0x17e   : > { %v399_v15 = vmul.f32 %v614_v13, %v398_v14 }
 0x180   : > { %v400_v16 = vmul.f32 %v399_v15, %v399_v15 }
 0x182   : > { %v401_v17 = vsel %vm388_vm5, %v400_v16, 0.0 }
 0x183   : > { %402 = vadd.xlane.f32.xlu0 %v401_v17 }
 0x210   : > { %v403_v18 = vpop.xlane.xlu0 %402 }
 0x211   : > { %406 = vst.msk [vmem:[%s284_s8] sm:$0xff] %vm404_vm6, %v403_v18 }
 0x212 PF: > { %s15_s17 = sadd.s32 1, %s682_s17   ;;  %s762_s15 = smov %s678_s16 }
 0x213   : > { %p12_p5 = scmp.ge.s32.totalorder %s15_s17, 4   ;;  %s763_s16 = smov %s765_s18 }
 0x215   :  { %14 = sbr.rel (!%p12_p5) target bundleno = 2 (0x2), region = 83 }

</bundles_post_ra>
